<compile_context>
chip_gen: v6e
topology: v6e:2x2x1
jax: 0.10.0
libtpu: 0.0.40
codegen_flags: <defaults>
</compile_context>

<pallas_src>
import functools
import math

import jax
import jax.numpy as jnp
from jax import lax
from jax.experimental import pallas as pl
from jax.experimental.pallas import tpu as pltpu

_EPS = 1e-5
_NEG_BIG = 1e9

_CP = pltpu.CompilerParams(
    dimension_semantics=("parallel",),
    vmem_limit_bytes=32 * 1024 * 1024,  # safe on v5e/v6e (128MiB) and v7x (64MiB)
)


# --------------------------- small helpers ----------------------------------

def _round_up(n, m):
    return ((n + m - 1) // m) * m


def _pad_rows(x, n_pad):
    pad = n_pad - x.shape[0]
    if pad <= 0:
        return x
    widths = [(0, pad)] + [(0, 0)] * (x.ndim - 1)
    return jnp.pad(x, widths)


def _pick_row_tile(n):
    # Bigger tiles amortize the ~0.35us/grid-step overhead; keep >=2 tiles
    # when possible so both v7x TensorCores get work on the "parallel" axis.
    if n <= 256:
        return 128
    if n <= 1024:
        return 256
    return 512


def _pick_tiles(n, c, s):
    t_lin = _pick_row_tile(n)
    # attention-path blocks carry ~3*S*C bf16 bytes per row; cap the block at
    # ~4MiB so double-buffering stays well inside VMEM on all generations.
    cap = (4 * 1024 * 1024) // max(1, 3 * s * c * 2)
    t_att = t_lin
    while t_att > 128 and t_att > cap:
        t_att //= 2               # stays a divisor of t_lin (128/256/512)
    return t_lin, t_att


def _row_spec(tile, *tail):
    tail = tuple(tail)

    def imap(i):
        return (i,) + (0,) * len(tail)

    return pl.BlockSpec((tile,) + tail, imap)


def _full_spec(shape):
    shape = tuple(shape)

    def imap(i):
        return (0,) * len(shape)

    return pl.BlockSpec(shape, imap)


def _stat_width(cout):
    return _round_up(2 * cout, 128)   # sum | sumsq packed side-by-side, lane-dense


def _stat_spec(cout):
    return pl.BlockSpec((8, _stat_width(cout)), lambda i: (i, 0))


def _stat_shape(num_tiles, cout):
    return jax.ShapeDtypeStruct((num_tiles * 8, _stat_width(cout)), jnp.float32)


def _affine_from_stats(stat, cout, count, gamma, beta):
    rows = stat[0::8]                       # one packed row per grid tile
    s = jnp.sum(rows[:, 0:cout], axis=0)
    sq = jnp.sum(rows[:, cout:2 * cout], axis=0)
    mean = s / count
    var = jnp.maximum(sq / count - mean * mean, 0.0)
    a = gamma * lax.rsqrt(var + _EPS)
    c = beta - mean * a
    return a, c


def _pack_vecs(c, *rows):
    out = [jnp.reshape(r, (c,)).astype(jnp.float32) for r in rows]
    out += [jnp.zeros((c,), jnp.float32)] * (8 - len(out))
    return jnp.stack(out, axis=0)           # (8, C) single small operand


# --------------------------- Pallas kernels ---------------------------------

def _emit_stats(stat_ref, ssum, ssq):
    # ssum/ssq: (1, cout) f32.  Pack side-by-side, pad lanes to >=128 and store
    # the whole (8, statw) block once (single unmasked, lane-dense store).
    statw = stat_ref.shape[1]
    cout = ssum.shape[1]
    parts = [ssum, ssq]
    if statw > 2 * cout:
        parts.append(jnp.zeros((1, statw - 2 * cout), jnp.float32))
    row = jnp.concatenate(parts, axis=1)
    rid = lax.broadcasted_iota(jnp.int32, (8, statw), 0)
    stat_ref[...] = jnp.where(rid == 0, jnp.broadcast_to(row, (8, statw)), 0.0)


def _lin_stats_kernel(x_ref, w_ref, rm_ref, stat_ref):
    # per-tile masked sum / sum-of-squares of y = x @ W (bias-free linear).
    y = jnp.dot(x_ref[...], w_ref[...], preferred_element_type=jnp.float32)
    ym = y * rm_ref[...]
    _emit_stats(stat_ref, jnp.sum(ym, axis=0, keepdims=True),
                jnp.sum(ym * y, axis=0, keepdims=True))


def _lin_bias_relu_kernel(x_ref, w_ref, c_ref, o_ref):
    # relu(x @ (W*a) + c): BN scale already folded into W on the host side.
    y = jnp.dot(x_ref[...], w_ref[...], preferred_element_type=jnp.float32)
    o_ref[...] = jnp.maximum(y + c_ref[...], 0.0).astype(o_ref.dtype)


def _qk_stats_kernel(x_ref, w1_ref, c1_ref, wqk_ref, rm_ref, f1_ref, stat_ref):
    # fc1 (norm1 scale folded into w1) + ReLU; emit f1 for reuse; stats of the
    # raw [q|k] pre-activations (their linear biases cancel inside BatchNorm).
    y1 = jnp.dot(x_ref[...], w1_ref[...], preferred_element_type=jnp.float32)
    f1 = jnp.maximum(y1 + c1_ref[...], 0.0)
    f1b = f1.astype(f1_ref.dtype)
    f1_ref[...] = f1b
    y = jnp.dot(f1b, wqk_ref[...], preferred_element_type=jnp.float32)
    ym = y * rm_ref[...]
    _emit_stats(stat_ref, jnp.sum(ym, axis=0, keepdims=True),
                jnp.sum(ym * y, axis=0, keepdims=True))


def _qkv_kernel(f1_ref, w_ref, b_ref, o_ref, *, c):
    # fused [q|k|v] projection; q/k BatchNorm folded into the weight/bias.
    # Single store: an iota column mask selects the ReLU'd q/k columns.
    y = jnp.dot(f1_ref[...], w_ref[...], preferred_element_type=jnp.float32)
    y = y + b_ref[...]
    col = lax.broadcasted_iota(jnp.int32, y.shape, 1)
    o_ref[...] = jnp.where(col < 2 * c, jnp.maximum(y, 0.0), y).astype(o_ref.dtype)


def _pe_relation(gath_ref, q_ref, a_pe, c_pe, bp2, wp2_ref, c, s):
    # shared pe-bias / relation computation for the two attention kernels.
    g = gath_ref[...]
    kg = g[:, :, 0:c].astype(jnp.float32)            # gathered keys        [T,S,C]
    pp = g[:, :, 2 * c:3 * c].astype(jnp.float32)    # gathered rel-pos@Wp1 [T,S,C]
    q = q_ref[...].astype(jnp.float32)               # query                [T,C]
    t = q.shape[0]
    hp = jnp.maximum(pp * a_pe + c_pe, 0.0)
    # TODO(synk): the (T,S,C)<->(T*S,C) reshapes relayout when C < 128 lanes;
    # a flattened (T*S, 3C) streaming layout would remove them.
    peb = (jnp.dot(hp.reshape(t * s, c).astype(jnp.bfloat16), wp2_ref[...],
                   preferred_element_type=jnp.float32) + bp2).reshape(t, s, c)
    rel = kg - q[:, None, :] + peb
    return rel, peb, t


def _we_stats_kernel(gath_ref, q_ref, mask_ref, vec_ref, wp2_ref, we1_ref,
                     stat_ref, *, c, s):
    # stats of the group-expanded weight-encoding pre-activation, restricted
    # to valid neighbour slots (mask weighting).
    v = vec_ref[...]
    a_pe, c_pe, bp2 = v[0:1, :], v[1:2, :], v[2:3, :]
    rel, _, t = _pe_relation(gath_ref, q_ref, a_pe, c_pe, bp2, wp2_ref, c, s)
    u = jnp.dot(rel.reshape(t * s, c).astype(jnp.bfloat16), we1_ref[...],
                preferred_element_type=jnp.float32).reshape(t, s, c)
    w = mask_ref[...][:, :, None]
    um = u * w
    _emit_stats(stat_ref,
                jnp.sum(jnp.sum(um, axis=1), axis=0, keepdims=True),
                jnp.sum(jnp.sum(um * u, axis=1), axis=0, keepdims=True))


def _attn_kernel(gath_ref, q_ref, mask_ref, rm_ref, vec_ref, wp2_ref, we1_ref,
                 we2_ref, o_ref, stat_ref, *, c, s):
    # Grouped vector attention core, vectorized over groups via group-expanded
    # lane-dense [C,C] weight-encoding weights; masked softmax over neighbours.
    v = vec_ref[...]
    a_pe, c_pe, bp2 = v[0:1, :], v[1:2, :], v[2:3, :]
    awe, cwe, be2 = v[3:4, :], v[4:5, :], v[5:6, :]
    rel, peb, t = _pe_relation(gath_ref, q_ref, a_pe, c_pe, bp2, wp2_ref, c, s)
    vg = gath_ref[:, :, c:2 * c].astype(jnp.float32)
    val = vg + peb
    u = jnp.dot(rel.reshape(t * s, c).astype(jnp.bfloat16), we1_ref[...],
                preferred_element_type=jnp.float32)
    hw = jnp.maximum(u * awe + cwe, 0.0)
    w3 = (jnp.dot(hw.astype(jnp.bfloat16), we2_ref[...],
                  preferred_element_type=jnp.float32) + be2).reshape(t, s, c)
    # invalid neighbour slots get a -1e9 logit bias so the softmax normalizes
    # over the valid neighbours only (fixes padded-slot normalization).
    bias = (mask_ref[...] - 1.0) * _NEG_BIG
    logits = w3 + bias[:, :, None]
    m = jnp.max(logits, axis=1, keepdims=True)
    e = jnp.exp(logits - m)
    den = jnp.sum(e, axis=1, keepdims=True)
    sm = e / den                                # exact (feeds BN statistics)
    attn = jnp.sum(val * sm, axis=1)            # [T, C]
    o_ref[...] = attn.astype(o_ref.dtype)
    am = attn * rm_ref[...]                     # row-masked stats for norm2
    _emit_stats(stat_ref, jnp.sum(am, axis=0, keepdims=True),
                jnp.sum(am * attn, axis=0, keepdims=True))


def _fc3_stats_kernel(attn_ref, vec_ref, w3_ref, rm_ref, stat_ref):
    # per-tile stats of fc3(relu(norm2(attn))) for norm3.
    v = vec_ref[...]
    a2, c2 = v[0:1, :], v[1:2, :]
    h = jnp.maximum(attn_ref[...].astype(jnp.float32) * a2 + c2, 0.0)
    y = jnp.dot(h.astype(jnp.bfloat16), w3_ref[...],
                preferred_element_type=jnp.float32)
    ym = y * rm_ref[...]
    _emit_stats(stat_ref, jnp.sum(ym, axis=0, keepdims=True),
                jnp.sum(ym * y, axis=0, keepdims=True))


def _epilogue_kernel(attn_ref, id_ref, vec_ref, w3_ref, o_ref):
    # fused norm2 + fc3 (norm3 scale folded into w3) + norm3 shift + residual + ReLU.
    v = vec_ref[...]
    a2, c2, c3 = v[0:1, :], v[1:2, :], v[2:3, :]
    h = jnp.maximum(attn_ref[...].astype(jnp.float32) * a2 + c2, 0.0)
    y = jnp.dot(h.astype(jnp.bfloat16), w3_ref[...],
                preferred_element_type=jnp.float32)
    o_ref[...] = jnp.maximum(id_ref[...].astype(jnp.float32) + y + c3,
                             0.0).astype(o_ref.dtype)


# --------------------------- plain-JAX glue ----------------------------------

def offset2batch(offset):
    counts = jnp.diff(jnp.concatenate([jnp.zeros((1,), offset.dtype), offset]))
    return jnp.repeat(jnp.arange(offset.shape[0], dtype=jnp.int32), counts)


@functools.partial(jax.jit, static_argnames=("n0", "tile"))
def _gridpool_mlp(fc_w, gamma, beta, feat, *, n0, tile):
    cin = feat.shape[1]
    cout = fc_w.shape[1]
    n_pad = _round_up(n0, tile)
    nt = n_pad // tile
    rowmask = (jnp.arange(n_pad) < n0).astype(jnp.float32).reshape(n_pad, 1)
    feat_pd = _pad_rows(feat, n_pad).astype(jnp.bfloat16)
    w_bf = fc_w.astype(jnp.bfloat16)
    stat = pl.pallas_call(
        _lin_stats_kernel, grid=(nt,), out_shape=_stat_shape(nt, cout),
        in_specs=[_row_spec(tile, cin), _full_spec(w_bf.shape),
                  _row_spec(tile, 1)],
        out_specs=_stat_spec(cout), compiler_params=_CP,
    )(feat_pd, w_bf, rowmask)
    a, c = _affine_from_stats(stat, cout, float(n0), gamma, beta)
    w_s = (fc_w * a[None, :]).astype(jnp.bfloat16)       # BN scale folded in
    featn = pl.pallas_call(
        _lin_bias_relu_kernel, grid=(nt,),
        out_shape=jax.ShapeDtypeStruct((n_pad, cout), jnp.float32),
        in_specs=[_row_spec(tile, cin), _full_spec(w_s.shape),
                  _full_spec((1, cout))],
        out_specs=_row_spec(tile, cout), compiler_params=_CP,
    )(feat_pd, w_s, c.reshape(1, cout))
    return featn[:n0]


def grid_pool(p, coord, feat, offset, grid_size):
    # GridPool: fc + BN + ReLU (tiled Pallas), then voxel-grid clustering +
    # segment reductions (plain JAX; data-dependent sizes).
    batch = offset2batch(offset)
    nbatch = offset.shape[0]
    n0 = feat.shape[0]
    featn = _gridpool_mlp(p['fc_w'], p['norm_g'], p['norm_b'],
                          feat.astype(jnp.float32), n0=n0,
                          tile=_pick_row_tile(n0))

    # TODO(synk): voxel-grid clustering / unique / segment reductions stay in
    # plain JAX (data-dependent output sizes have no Pallas equivalent).
    start = jax.ops.segment_min(coord, batch, num_segments=nbatch)
    rel = coord - start[batch]
    vox = jnp.floor(rel / grid_size).astype(jnp.int32)
    big = 64
    key = ((batch * big + vox[:, 0]) * big + vox[:, 1]) * big + vox[:, 2]
    unique, cluster, counts = jnp.unique(key, return_inverse=True,
                                         return_counts=True)
    ncl = int(unique.shape[0])
    new_coord = jax.ops.segment_sum(coord, cluster, ncl) / counts[:, None].astype(jnp.float32)
    new_feat = jax.ops.segment_max(featn, cluster, ncl)
    new_batch = jax.ops.segment_min(batch, cluster, ncl)
    new_counts = jnp.bincount(new_batch, length=nbatch)
    new_offset = jnp.cumsum(new_counts).astype(jnp.int32)
    return new_coord, new_feat, new_offset, cluster


def knn_query(k, coord, offset):
    # TODO(synk): brute-force per-batch knn stays host-driven (data-dependent
    # batch sizes); pads missing neighbours with -1.
    offs = [0] + [int(o) for o in offset]
    idx_all = []
    for b in range(offset.shape[0]):
        s, e = offs[b], offs[b + 1]
        c = coord[s:e]
        n = e - s
        d = jnp.sum((c[:, None, :] - c[None, :, :]) ** 2, axis=-1)
        kk = min(k, n)
        nn = jnp.argsort(d, axis=1)[:, :kk].astype(jnp.int32) + s
        if kk < k:
            pad = jnp.full((n, k - kk), -1, jnp.int32)
            nn = jnp.concatenate([nn, pad], axis=1)
        idx_all.append(nn)
    return jnp.concatenate(idx_all, axis=0)


@functools.partial(jax.jit,
                   static_argnames=("n", "n_pad", "t_lin", "t_att", "groups"))
def block_forward(p, feat_p, pos_p, sidx_p, mask_p, rowmask, pos_mean, pos_cov,
                  valid_cnt, *, n, n_pad, t_lin, t_att, groups):
    ap = p['attn']
    c = feat_p.shape[1]
    s = mask_p.shape[1]
    i_sz = c // groups
    nt_l = n_pad // t_lin
    nt_a = n_pad // t_att
    nf = float(n)

    # ---- norm1 statistics (fc1 pre-activation) ----
    fc1_bf = p['fc1_w'].astype(jnp.bfloat16)
    stat1 = pl.pallas_call(
        _lin_stats_kernel, grid=(nt_l,), out_shape=_stat_shape(nt_l, c),
        in_specs=[_row_spec(t_lin, c), _full_spec(fc1_bf.shape),
                  _row_spec(t_lin, 1)],
        out_specs=_stat_spec(c), compiler_params=_CP,
    )(feat_p, fc1_bf, rowmask)
    a1, c1 = _affine_from_stats(stat1, c, nf, p['n1_g'], p['n1_b'])
    fc1_s = (p['fc1_w'] * a1[None, :]).astype(jnp.bfloat16)

    # ---- q/k pre-activation statistics + f1 emission (fc1 computed once) ----
    wqk = jnp.concatenate([ap['q_w'], ap['k_w']], axis=1).astype(jnp.bfloat16)
    f1_p, statqk = pl.pallas_call(
        _qk_stats_kernel, grid=(nt_l,),
        out_shape=(jax.ShapeDtypeStruct((n_pad, c), jnp.bfloat16),
                   _stat_shape(nt_l, 2 * c)),
        in_specs=[_row_spec(t_lin, c), _full_spec(fc1_s.shape),
                  _full_spec((1, c)), _full_spec(wqk.shape),
                  _row_spec(t_lin, 1)],
        out_specs=(_row_spec(t_lin, c), _stat_spec(2 * c)),
        compiler_params=_CP,
    )(feat_p, fc1_s, c1.reshape(1, c), wqk, rowmask)
    gqk = jnp.concatenate([ap['q_g'], ap['k_g']])
    btqk = jnp.concatenate([ap['q_beta'], ap['k_beta']])
    aqk, cqk = _affine_from_stats(statqk, 2 * c, nf, gqk, btqk)

    # ---- fused q/k/v projection (q/k BN folded into weight & bias) ----
    wqkv = jnp.concatenate([ap['q_w'], ap['k_w'], ap['v_w']], axis=1)
    scale = jnp.concatenate([aqk, jnp.ones((c,), jnp.float32)])
    wqkv_s = (wqkv * scale[None, :]).astype(jnp.bfloat16)
    bqkv = jnp.concatenate([cqk, ap['v_b']]).reshape(1, 3 * c)
    qkv = pl.pallas_call(
        functools.partial(_qkv_kernel, c=c), grid=(nt_l,),
        out_shape=jax.ShapeDtypeStruct((n_pad, 3 * c), jnp.bfloat16),
        in_specs=[_row_spec(t_lin, c), _full_spec(wqkv_s.shape),
                  _full_spec((1, 3 * c))],
        out_specs=_row_spec(t_lin, 3 * c), compiler_params=_CP,
    )(f1_p, wqkv_s, bqkv)

    # ---- neighbour gather (plain JAX, bf16) ----
    # TODO(synk): an in-kernel gather (VMEM-resident kv table + jnp.take or a
    # pl.ANY manual-DMA row gather) would remove this [n,S,3C] HBM stream.
    pos_proj = jnp.einsum('nsd,dc->nsc', pos_p, ap['pb1_w']).astype(jnp.bfloat16)
    kv_g = qkv[:, c:3 * c][sidx_p]                    # (n_pad, S, 2C) bf16
    gath_p = jnp.concatenate([kv_g, pos_proj], axis=2)
    q_p = qkv[:, 0:c]

    # ---- pe_bias BN affine (analytic, from masked relative-position moments) ----
    mu_d = pos_mean @ ap['pb1_w']
    var_p = jnp.maximum(jnp.diag(ap['pb1_w'].T @ pos_cov @ ap['pb1_w']), 0.0)
    a_pe = ap['pb1_g'] * lax.rsqrt(var_p + _EPS)
    c_pe = ap['pb1_beta'] - mu_d * a_pe               # pb1 bias cancels in BN

    # ---- group-expanded, lane-dense weight-encoding weights ----
    we1e = jnp.repeat(ap['we1_w'], i_sz, axis=1).astype(jnp.bfloat16)
    we2e = (jnp.repeat(jnp.repeat(ap['we2_w'], i_sz, axis=0), i_sz, axis=1)
            / i_sz).astype(jnp.bfloat16)
    be2e = jnp.repeat(ap['we2_b'], i_sz)
    ge = jnp.repeat(ap['we1_g'], i_sz)
    bte = jnp.repeat(ap['we1_beta'], i_sz)
    wp2_bf = ap['pb2_w'].astype(jnp.bfloat16)

    # ---- weight-encoding BN statistics (valid neighbour slots only) ----
    vec_pe = _pack_vecs(c, a_pe, c_pe, ap['pb2_b'])
    statwe = pl.pallas_call(
        functools.partial(_we_stats_kernel, c=c, s=s), grid=(nt_a,),
        out_shape=_stat_shape(nt_a, c),
        in_specs=[_row_spec(t_att, s, 3 * c), _row_spec(t_att, c),
                  _row_spec(t_att, s), _full_spec((8, c)),
                  _full_spec(wp2_bf.shape), _full_spec(we1e.shape)],
        out_specs=_stat_spec(c), compiler_params=_CP,
    )(gath_p, q_p, mask_p, vec_pe, wp2_bf, we1e)
    awe, cwe = _affine_from_stats(statwe, c, valid_cnt, ge, bte)

    # ---- fused attention (pe_bias + weight encoding + masked softmax + sum) ----
    vec_at = _pack_vecs(c, a_pe, c_pe, ap['pb2_b'], awe, cwe, be2e)
    attn_p, stat2 = pl.pallas_call(
        functools.partial(_attn_kernel, c=c, s=s), grid=(nt_a,),
        out_shape=(jax.ShapeDtypeStruct((n_pad, c), jnp.bfloat16),
                   _stat_shape(nt_a, c)),
        in_specs=[_row_spec(t_att, s, 3 * c), _row_spec(t_att, c),
                  _row_spec(t_att, s), _row_spec(t_att, 1),
                  _full_spec((8, c)), _full_spec(wp2_bf.shape),
                  _full_spec(we1e.shape), _full_spec(we2e.shape)],
        out_specs=(_row_spec(t_att, c), _stat_spec(c)), compiler_params=_CP,
    )(gath_p, q_p, mask_p, rowmask, vec_at, wp2_bf, we1e, we2e)
    a2, c2 = _affine_from_stats(stat2, c, nf, p['n2_g'], p['n2_b'])

    # ---- norm3 statistics (fc3 pre-activation) ----
    fc3_bf = p['fc3_w'].astype(jnp.bfloat16)
    vec_n2 = _pack_vecs(c, a2, c2)
    stat3 = pl.pallas_call(
        _fc3_stats_kernel, grid=(nt_l,), out_shape=_stat_shape(nt_l, c),
        in_specs=[_row_spec(t_lin, c), _full_spec((8, c)),
                  _full_spec(fc3_bf.shape), _row_spec(t_lin, 1)],
        out_specs=_stat_spec(c), compiler_params=_CP,
    )(attn_p, vec_n2, fc3_bf, rowmask)
    a3, c3 = _affine_from_stats(stat3, c, nf, p['n3_g'], p['n3_b'])
    fc3_s = (p['fc3_w'] * a3[None, :]).astype(jnp.bfloat16)

    # ---- fused epilogue: norm2 + fc3 + norm3 + residual + ReLU ----
    vec_ep = _pack_vecs(c, a2, c2, c3)
    out_p = pl.pallas_call(
        _epilogue_kernel, grid=(nt_l,),
        out_shape=jax.ShapeDtypeStruct((n_pad, c), jnp.bfloat16),
        in_specs=[_row_spec(t_lin, c), _row_spec(t_lin, c),
                  _full_spec((8, c)), _full_spec(fc3_s.shape)],
        out_specs=_row_spec(t_lin, c), compiler_params=_CP,
    )(attn_p, feat_p, vec_ep, fc3_s)
    return out_p


def encoder_forward(params, coord, feat, offset, *, grid_size, neighbours,
                    groups):
    coord2, feat2, offset2, cluster = grid_pool(params['down'], coord, feat,
                                                offset, grid_size)
    ref_idx = knn_query(neighbours, coord2, offset2)

    n = int(coord2.shape[0])
    c = feat2.shape[1]
    s = neighbours
    t_lin, t_att = _pick_tiles(n, c, s)
    n_pad = _round_up(n, t_lin)

    mask = (ref_idx >= 0)
    sidx = jnp.where(mask, ref_idx, 0)
    maskf = mask.astype(jnp.float32)
    valid_cnt = jnp.sum(maskf)

    rowmask = (jnp.arange(n_pad) < n).astype(jnp.float32).reshape(n_pad, 1)
    mask_p = _pad_rows(maskf, n_pad)
    sidx_p = _pad_rows(sidx, n_pad)
    pos = coord2[sidx] - coord2[:, None, :]            # (n, S, 3)
    pos_p = _pad_rows(pos * maskf[:, :, None], n_pad)

    # relative-position moments over VALID neighbour slots only (shared by all
    # blocks; used to derive the pe_bias BatchNorm affine analytically).
    pos_flat = pos.reshape(-1, 3)
    w_flat = maskf.reshape(-1, 1)
    pos_mean = jnp.sum(pos_flat * w_flat, axis=0) / valid_cnt
    pos_cov = ((pos_flat * w_flat).T @ pos_flat / valid_cnt
               - jnp.outer(pos_mean, pos_mean))

    feat_p = _pad_rows(feat2, n_pad).astype(jnp.bfloat16)
    for blk in params['blocks']:
        feat_p = block_forward(blk, feat_p, pos_p, sidx_p, mask_p, rowmask,
                               pos_mean, pos_cov, valid_cnt,
                               n=n, n_pad=n_pad, t_lin=t_lin, t_att=t_att,
                               groups=groups)
    feat_out = feat_p[:n].astype(jnp.float32)
    return (coord2, feat_out, offset2, None), cluster


# --------------------------- parameter init ----------------------------------

def _init_linear(key, cin, cout, bias):
    k1, k2 = jax.random.split(key)
    w = jax.random.normal(k1, (cin, cout), jnp.float32) / math.sqrt(cin)
    b = (jax.random.normal(k2, (cout,), jnp.float32) * 0.02) if bias else None
    return w, b


def init_encoder_params(key, in_channels, embed_channels, groups, depth):
    keys = jax.random.split(key, 1 + depth)
    c = embed_channels
    fc_w, _ = _init_linear(keys[0], in_channels, c, bias=False)
    ones_c = jnp.ones((c,), jnp.float32)
    zeros_c = jnp.zeros((c,), jnp.float32)
    params = {'down': {'fc_w': fc_w, 'norm_g': ones_c, 'norm_b': zeros_c}}
    blocks = []
    for d in range(depth):
        ks = jax.random.split(keys[1 + d], 9)
        qw, qb = _init_linear(ks[0], c, c, True)
        kw, kb = _init_linear(ks[1], c, c, True)
        vw, vb = _init_linear(ks[2], c, c, True)
        pb1w, pb1b = _init_linear(ks[3], 3, c, True)
        pb2w, pb2b = _init_linear(ks[4], c, c, True)
        we1w, we1b = _init_linear(ks[5], c, groups, True)
        we2w, we2b = _init_linear(ks[6], groups, groups, True)
        fc1w, _ = _init_linear(ks[7], c, c, False)
        fc3w, _ = _init_linear(ks[8], c, c, False)
        blocks.append({
            'fc1_w': fc1w, 'n1_g': ones_c, 'n1_b': zeros_c,
            'n2_g': ones_c, 'n2_b': zeros_c,
            'fc3_w': fc3w, 'n3_g': ones_c, 'n3_b': zeros_c,
            'attn': {
                'q_w': qw, 'q_b': qb, 'q_g': ones_c, 'q_beta': zeros_c,
                'k_w': kw, 'k_b': kb, 'k_g': ones_c, 'k_beta': zeros_c,
                'v_w': vw, 'v_b': vb,
                'pb1_w': pb1w, 'pb1_b': pb1b, 'pb1_g': ones_c,
                'pb1_beta': zeros_c,
                'pb2_w': pb2w, 'pb2_b': pb2b,
                'we1_w': we1w, 'we1_b': we1b,
                'we1_g': jnp.ones((groups,), jnp.float32),
                'we1_beta': jnp.zeros((groups,), jnp.float32),
                'we2_w': we2w, 'we2_b': we2b,
            }})
    params['blocks'] = blocks
    return params


# --------------------------------- main ---------------------------------------

if __name__ == "__main__":
    key = jax.random.PRNGKey(0)
    kc, kf, kp = jax.random.split(key, 3)

    # small synthetic point cloud: 2 batches of 48 points, 16 input channels
    B, n_per_batch = 2, 48
    in_channels, embed_channels, groups, depth = 16, 32, 4, 2
    neighbours, grid_size = 8, 0.06

    coord = jax.random.uniform(kc, (B * n_per_batch, 3), jnp.float32)
    feat = jax.random.normal(kf, (B * n_per_batch, in_channels), jnp.float32)
    offset = jnp.array([n_per_batch, 2 * n_per_batch], jnp.int32)

    params = init_encoder_params(kp, in_channels, embed_channels, groups, depth)

    (points_out, cluster) = encoder_forward(
        params, coord, feat, offset,
        grid_size=grid_size, neighbours=neighbours, groups=groups)
    coord_o, feat_o, offset_o, _ = points_out

    jax.block_until_ready(feat_o)
    jax.block_until_ready(coord_o)
    jax.block_until_ready(cluster)
    assert feat_o.shape[1] == embed_channels and feat_o.shape[0] == coord_o.shape[0]
    assert bool(jnp.all(jnp.isfinite(feat_o)))
    print("KERNEL_OK")
</pallas_src>

<mosaic_0001>
module attributes {stable_mosaic.version = 11 : i64} {
  func.func @_lin_stats_kernel(%arg0: i32, %arg1: memref<128x16xbf16, #tpu.memory_space<vmem>>, %arg2: memref<16x32xbf16, #tpu.memory_space<vmem>>, %arg3: memref<128x1xf32, #tpu.memory_space<vmem>>, %arg4: memref<8x128xf32, #tpu.memory_space<vmem>>) attributes {dimension_semantics = [#tpu.dimension_semantics<parallel>], iteration_bounds = array<i64: 1>, scalar_prefetch = 0 : i64, scratch_operands = 0 : i64, tpu.core_type = #tpu.core_type<tc>, window_params = [{transform_indices = @transform_0, window_bounds = array<i64: 128, 16>}, {pipeline_mode = #tpu.pipeline_mode<synchronous>, transform_indices = @transform_1, window_bounds = array<i64: 16, 32>}, {transform_indices = @transform_2, window_bounds = array<i64: 128, 1>}, {transform_indices = @transform_3, window_bounds = array<i64: 8, 128>}]} {
    %c0 = arith.constant 0 : index
    %c0_0 = arith.constant 0 : index
    %0 = vector.load %arg1[%c0, %c0_0] : memref<128x16xbf16, #tpu.memory_space<vmem>>, vector<128x16xbf16>
    %c0_1 = arith.constant 0 : index
    %c0_2 = arith.constant 0 : index
    %1 = vector.load %arg2[%c0_1, %c0_2] : memref<16x32xbf16, #tpu.memory_space<vmem>>, vector<16x32xbf16>
    %cst = arith.constant dense<0.000000e+00> : vector<128x32xf32>
    %2 = tpu.matmul %0, %1, %cst {dimension_numbers = #tpu.dot_dimension_numbers<[1], [0], [0], [1], [0, 0, 1, 1], [], []>} : vector<128x16xbf16>, vector<16x32xbf16>, vector<128x32xf32> -> vector<128x32xf32>
    %c0_3 = arith.constant 0 : index
    %c0_4 = arith.constant 0 : index
    %3 = vector.load %arg3[%c0_3, %c0_4] : memref<128x1xf32, #tpu.memory_space<vmem>>, vector<128x1xf32>
    %4 = vector.broadcast %3 : vector<128x1xf32> to vector<128x32xf32>
    %5 = arith.mulf %2, %4 : vector<128x32xf32>
    %cst_5 = arith.constant dense<0.000000e+00> : vector<32xf32>
    %6 = vector.multi_reduction <add>, %5, %cst_5 [0] : vector<128x32xf32> to vector<32xf32>
    %7 = vector.shape_cast %6 : vector<32xf32> to vector<1x32xf32>
    %8 = arith.mulf %5, %2 : vector<128x32xf32>
    %cst_6 = arith.constant dense<0.000000e+00> : vector<32xf32>
    %9 = vector.multi_reduction <add>, %8, %cst_6 [0] : vector<128x32xf32> to vector<32xf32>
    %10 = vector.shape_cast %9 : vector<32xf32> to vector<1x32xf32>
    %cst_7 = arith.constant 0.000000e+00 : f32
    %11 = vector.broadcast %cst_7 : f32 to vector<1x64xf32>
    %12 = tpu.concatenate %7, %10, %11 in 1 : vector<1x32xf32>, vector<1x32xf32>, vector<1x64xf32> -> vector<1x128xf32>
    %13 = tpu.iota {dimensions = array<i32: 0>} : vector<8x128xi32>
    %c0_i32 = arith.constant 0 : i32
    %14 = vector.broadcast %c0_i32 : i32 to vector<8x128xi32>
    %15 = arith.cmpi eq, %13, %14 : vector<8x128xi32>
    %16 = vector.shape_cast %12 : vector<1x128xf32> to vector<1x128xf32>
    %17 = vector.broadcast %16 : vector<1x128xf32> to vector<8x128xf32>
    %cst_8 = arith.constant 0.000000e+00 : f32
    %18 = vector.broadcast %cst_8 : f32 to vector<8x128xf32>
    %19 = arith.select %15, %17, %18 : vector<8x128xi1>, vector<8x128xf32>
    %c0_9 = arith.constant 0 : index
    %c0_10 = arith.constant 0 : index
    %20 = vector.load %arg4[%c0_9, %c0_10] : memref<8x128xf32, #tpu.memory_space<vmem>>, vector<8x128xf32>
    tpu.vector_store %arg4[%c0_9, %c0_10], %19 {strides = array<i32>} : memref<8x128xf32, #tpu.memory_space<vmem>>, vector<8x128xf32>,
    return
  }
  func.func @transform_0(%arg0: i32) -> (i32, i32) {
    %c0_i32 = arith.constant 0 : i32
    %c0_i32_0 = arith.constant 0 : i32
    return %arg0, %c0_i32 : i32, i32
  }
  func.func @transform_1(%arg0: i32) -> (i32, i32) {
    %c0_i32 = arith.constant 0 : i32
    %c0_i32_0 = arith.constant 0 : i32
    %c0_i32_1 = arith.constant 0 : i32
    return %c0_i32, %c0_i32_0 : i32, i32
  }
  func.func @transform_2(%arg0: i32) -> (i32, i32) {
    %c0_i32 = arith.constant 0 : i32
    %c0_i32_0 = arith.constant 0 : i32
    return %arg0, %c0_i32 : i32, i32
  }
  func.func @transform_3(%arg0: i32) -> (i32, i32) {
    %c0_i32 = arith.constant 0 : i32
    %c0_i32_0 = arith.constant 0 : i32
    return %arg0, %c0_i32 : i32, i32
  }
}

module attributes {stable_mosaic.version = 11 : i64} {
  func.func @_lin_bias_relu_kernel(%arg0: i32, %arg1: memref<128x16xbf16, #tpu.memory_space<vmem>>, %arg2: memref<16x32xbf16, #tpu.memory_space<vmem>>, %arg3: memref<1x32xf32, #tpu.memory_space<vmem>>, %arg4: memref<128x32xf32, #tpu.memory_space<vmem>>) attributes {dimension_semantics = [#tpu.dimension_semantics<parallel>], iteration_bounds = array<i64: 1>, scalar_prefetch = 0 : i64, scratch_operands = 0 : i64, tpu.core_type = #tpu.core_type<tc>, window_params = [{transform_indices = @transform_0, window_bounds = array<i64: 128, 16>}, {pipeline_mode = #tpu.pipeline_mode<synchronous>, transform_indices = @transform_1, window_bounds = array<i64: 16, 32>}, {pipeline_mode = #tpu.pipeline_mode<synchronous>, transform_indices = @transform_2, window_bounds = array<i64: 1, 32>}, {transform_indices = @transform_3, window_bounds = array<i64: 128, 32>}]} {
    %c0 = arith.constant 0 : index
    %c0_0 = arith.constant 0 : index
    %0 = vector.load %arg1[%c0, %c0_0] : memref<128x16xbf16, #tpu.memory_space<vmem>>, vector<128x16xbf16>
    %c0_1 = arith.constant 0 : index
    %c0_2 = arith.constant 0 : index
    %1 = vector.load %arg2[%c0_1, %c0_2] : memref<16x32xbf16, #tpu.memory_space<vmem>>, vector<16x32xbf16>
    %cst = arith.constant dense<0.000000e+00> : vector<128x32xf32>
    %2 = tpu.matmul %0, %1, %cst {dimension_numbers = #tpu.dot_dimension_numbers<[1], [0], [0], [1], [0, 0, 1, 1], [], []>} : vector<128x16xbf16>, vector<16x32xbf16>, vector<128x32xf32> -> vector<128x32xf32>
    %c0_3 = arith.constant 0 : index
    %c0_4 = arith.constant 0 : index
    %3 = vector.load %arg3[%c0_3, %c0_4] : memref<1x32xf32, #tpu.memory_space<vmem>>, vector<1x32xf32>
    %4 = vector.broadcast %3 : vector<1x32xf32> to vector<128x32xf32>
    %5 = arith.addf %2, %4 : vector<128x32xf32>
    %cst_5 = arith.constant 0.000000e+00 : f32
    %6 = vector.broadcast %cst_5 : f32 to vector<128x32xf32>
    %7 = arith.maximumf %5, %6 : vector<128x32xf32>
    %c0_6 = arith.constant 0 : index
    %c0_7 = arith.constant 0 : index
    %8 = vector.load %arg4[%c0_6, %c0_7] : memref<128x32xf32, #tpu.memory_space<vmem>>, vector<128x32xf32>
    tpu.vector_store %arg4[%c0_6, %c0_7], %7 {strides = array<i32>} : memref<128x32xf32, #tpu.memory_space<vmem>>, vector<128x32xf32>,
    return
  }
  func.func @transform_0(%arg0: i32) -> (i32, i32) {
    %c0_i32 = arith.constant 0 : i32
    %c0_i32_0 = arith.constant 0 : i32
    return %arg0, %c0_i32 : i32, i32
  }
  func.func @transform_1(%arg0: i32) -> (i32, i32) {
    %c0_i32 = arith.constant 0 : i32
    %c0_i32_0 = arith.constant 0 : i32
    %c0_i32_1 = arith.constant 0 : i32
    return %c0_i32, %c0_i32_0 : i32, i32
  }
  func.func @transform_2(%arg0: i32) -> (i32, i32) {
    %c0_i32 = arith.constant 0 : i32
    %c0_i32_0 = arith.constant 0 : i32
    %c0_i32_1 = arith.constant 0 : i32
    return %c0_i32, %c0_i32_0 : i32, i32
  }
  func.func @transform_3(%arg0: i32) -> (i32, i32) {
    %c0_i32 = arith.constant 0 : i32
    %c0_i32_0 = arith.constant 0 : i32
    return %arg0, %c0_i32 : i32, i32
  }
}

</mosaic_0001>

<bundles_post_ra>
// kernel: _gridpool_mlp.2
= control target key start
LH: loop header
LB: loop body
LE: loop exit
PB: predicated region body
PF: predicated region fallthrough
CT: control target
= control target key end

     0   :  { %v483_v1 = vmov 0   ;;  %vm79_vm0 = vcmask 130048   ;;  %vm313_vm1 = vcmask 261120   ;;  %vm409_vm2 = vcmask 523264   ;;  %s636_s1 = inlined_call_operand.vmem [shape: bf16[16,32], index: 1, kind: input, shape index: {}]   ;;  %s637_s0 = inlined_call_operand.vmem [shape: bf16[128,16], index: 0, kind: input, shape index: {}]   ;;  %s638_s2 = inlined_call_operand.vmem [shape: f32[128,1], index: 2, kind: input, shape index: {}]   ;;  %s639_s3 = inlined_call_operand.vmem [shape: f32[8,128], index: 3, kind: output, shape index: {}]  }
   0x1   :  { %v474_v0 = vld [vmem:[%s636_s1] sm:$0xff]   ;;  %472 = vset.pattern.permute.xlu0 %v483_v1  ;;  %473 = vset.pattern.permute.xlu1 %v483_v1  ;;  %v477_v4 = vld [vmem:[%s637_s0 + $0x8] sm:$0xff]   ;;  %v479_v6 = vld [vmem:[%s637_s0 + $0x10] sm:$0xff]  }
   0x2   :  { %v475_v2 = vld [vmem:[%s637_s0] sm:$0xff]   ;;  %450 = vmatprep.subr.bf16.mxu0 %v474_v0  ;;  %468 = vmatprep.subr.bf16.mxu1 %v474_v0  ;;  %v478_v5 = vld [vmem:[%s637_s0 + $0x28] sm:$0xff]   ;;  %v480_v7 = vld [vmem:[%s637_s0 + $0x30] sm:$0xff]  }
   0x3   :  { %v476_v3 = vld [vmem:[%s637_s0 + $0x20] sm:$0xff]   ;;  %451 = vmatpush3.bf16.msra.mxu0 %v474_v0  ;;  %469 = vmatpush3.bf16.msra.mxu1 %v474_v0  ;;  %v203_v9 = vld [vmem:[%s638_s2 + $0x10] sm:$0xff]  ;;  %v481_v10 = vld [vmem:[%s637_s0 + $0x18] sm:$0xff]  }
   0x4   :  { %452 = vmatprep.mubr.msk.bf16.mxu0 %vm79_vm0, %v475_v2  ;;  %460 = vmatprep.mubr.msk.bf16.mxu1 %vm79_vm0, %v476_v3  ;;  %v201_v8 = vld [vmem:[%s638_s2] sm:$0xff]  ;;  %v482_v11 = vld [vmem:[%s637_s0 + $0x38] sm:$0xff]   ;;  %v202_v12 = vld [vmem:[%s638_s2 + $0x8] sm:$0xff] }
   0x5   :  { %219 = vperm.xlu0 %472, %v201_v8   ;;  %229 = vperm.xlu1 %473, %v203_v9   ;;  %v204_v13 = vld [vmem:[%s638_s2 + $0x18] sm:$0xff]  ;;  %v205_v14 = vld [vmem:[%s638_s2 + $0x20] sm:$0xff]  ;;  %v206_v15 = vld [vmem:[%s638_s2 + $0x28] sm:$0xff] }
   0x6   :  { %453 = vmatmul.mubr.msk.bf16.vlgmr.msra.gmra.mxu0 %vm79_vm0, %v477_v4  ;;  %461 = vmatmul.mubr.msk.bf16.vlgmr.msra.gmra.mxu1 %vm79_vm0, %v478_v5  ;;  %v207_v16 = vld [vmem:[%s638_s2 + $0x30] sm:$0xff]  ;;  %v208_v17 = vld [vmem:[%s638_s2 + $0x38] sm:$0xff]  ;;  %v209_v18 = vld [vmem:[%s638_s2 + $0x40] sm:$0xff] }
   0x7   :  { %456 = vmatprep.mubr.msk.bf16.mxu0 %vm79_vm0, %v479_v6  ;;  %464 = vmatprep.mubr.msk.bf16.mxu1 %vm79_vm0, %v480_v7  ;;  %v210_v19 = vld [vmem:[%s638_s2 + $0x48] sm:$0xff]  ;;  %v211_v20 = vld [vmem:[%s638_s2 + $0x50] sm:$0xff]  ;;  %v212_v21 = vld [vmem:[%s638_s2 + $0x58] sm:$0xff] }
   0x8   :  { %v213_v22 = vld [vmem:[%s638_s2 + $0x60] sm:$0xff]  ;;  %v214_v23 = vld [vmem:[%s638_s2 + $0x68] sm:$0xff]  ;;  %v215_v24 = vld [vmem:[%s638_s2 + $0x70] sm:$0xff] }
   0x9   :  { %224 = vperm.xlu0 %472, %v202_v12   ;;  %234 = vperm.xlu1 %473, %v204_v13   ;;  %v216_v25 = vld [vmem:[%s638_s2 + $0x78] sm:$0xff]  ;;  %s484_s2 = smov 32  }
   0xd   :  { %239 = vperm.xlu0 %472, %v205_v14   ;;  %244 = vperm.xlu1 %473, %v206_v15  }
   0xe   :  { %457 = vmatmul.mubr.msk.bf16.gmra.mxu0 %vm79_vm0, %v481_v10  ;;  %465 = vmatmul.mubr.msk.bf16.gmra.mxu1 %vm79_vm0, %v482_v11 }
  0x11   :  { %249 = vperm.xlu0 %472, %v207_v16   ;;  %254 = vperm.xlu1 %473, %v208_v17  }
  0x15   :  { %259 = vperm.xlu0 %472, %v209_v18   ;;  %264 = vperm.xlu1 %473, %v210_v19  }
  0x19   :  { %269 = vperm.xlu0 %472, %v211_v20   ;;  %274 = vperm.xlu1 %473, %v212_v21  }
  0x1d   :  { %279 = vperm.xlu0 %472, %v213_v22   ;;  %284 = vperm.xlu1 %473, %v214_v23  }
  0x21   :  { %289 = vperm.xlu0 %472, %v215_v24   ;;  %294 = vperm.xlu1 %473, %v216_v25  }
  0x80   :  { %v220_v26 = vpop.permute.xlu0 %219  ;;  %v230_v27 = vpop.permute.xlu1 %229 }
  0x84   :  { %v225_v28 = vpop.permute.xlu0 %224  ;;  %v235_v29 = vpop.permute.xlu1 %234 }
  0x88   :  { %v240_v30 = vpop.permute.xlu0 %239  ;;  %v245_v33 = vpop.permute.xlu1 %244 }
  0x8c   :  { %v250_v38 = vpop.permute.xlu0 %249  ;;  %v255_v42 = vpop.permute.xlu1 %254 }
  0x90   :  { %v260_v55 = vpop.permute.xlu0 %259  ;;  %v265_v61 = vpop.permute.xlu1 %264 }
  0x94   :  { %v270_v14 = vpop.permute.xlu0 %269  ;;  %v275_v22 = vpop.permute.xlu1 %274 }
  0xc6   :  { %v454_v31 = vpop.f32.mrf.mxu0  ;;  %v588_v32 = vpop.f32.mrf.mxu1 }
  0xc7   :  { %v299_v39 = vmul.f32 %v454_v31, %v230_v27 }
  0xc8   :  { %v138_v34 = vpop.f32.mrf.mxu0  ;;  %v170_v35 = vpop.f32.mrf.mxu1 }
  0xc9   :  { %v297_v36 = vmul.f32 %v220_v26, %v138_v34  ;;  %v353_v47 = vmul.f32 %v454_v31, %v299_v39  ;;  %v317_v53 = vsel %vm313_vm1, %v299_v39, 0.0  ;;  %v305_v15 = vmul.f32 %v260_v55, %v170_v35 }
  0xca   :  { %v455_v37 = vpop.f32.mrf.mxu0  ;;  %v590_v40 = vpop.f32.mrf.mxu1  ;;  %v307_v31 = vmul.f32 %v588_v32, %v270_v14 }
  0xcb   :  { %v351_v43 = vmul.f32 %v297_v36, %v138_v34  ;;  %v300_v44 = vmul.f32 %v455_v37, %v235_v29  ;;  %v314_v48 = vsel %vm313_vm1, %v297_v36, 0.0  ;;  %v370_v0 = vsel %vm313_vm1, %v353_v47, 0.0 }
  0xcc   :  { %v141_v41 = vpop.f32.mrf.mxu0  ;;  %v173_v51 = vpop.f32.mrf.mxu1  ;;  %v333_v55 = vsel %vm313_vm1, %v307_v31, 0.0 }
  0xcd   :  { %v298_v45 = vmul.f32 %v225_v28, %v141_v41  ;;  %v367_v56 = vsel %vm313_vm1, %v351_v43, 0.0  ;;  %v354_v57 = vmul.f32 %v455_v37, %v300_v44  ;;  %v319_v1 = vsel %vm313_vm1, %v300_v44, 0.0  ;;  %v280_v37 = vpop.permute.xlu0 %279 }
  0xce   :  { %v458_v46 = vpop.f32.mrf.mxu0  ;;  %v599_v2 = vpop.f32.mrf.mxu1  ;;  %v306_v24 = vmul.f32 %v265_v61, %v173_v51 }
  0xcf   :  { %v315_v49 = vsel %vm313_vm1, %v298_v45, 0.0  ;;  %v352_v50 = vmul.f32 %v298_v45, %v141_v41  ;;  %v303_v6 = vmul.f32 %v458_v46, %v250_v38  ;;  %v372_v8 = vsel %vm313_vm1, %v354_v57, 0.0  ;;  %v285_v45 = vpop.permute.xlu1 %284 }
  0xd0   :  { %v154_v52 = vpop.f32.mrf.mxu0  ;;  %v316_v54 = vadd.f32 %v315_v49, %v314_v48  ;;  %v186_v17 = vpop.f32.mrf.mxu1  ;;  %v329_v41 = vsel %vm313_vm1, %v305_v15, 0.0  ;;  %v360_v43 = vmul.f32 %v306_v24, %v173_v51 }
  0xd1   :  { %v368_v58 = vsel %vm313_vm1, %v352_v50, 0.0  ;;  %v301_v59 = vmul.f32 %v240_v30, %v154_v52  ;;  %v357_v18 = vmul.f32 %v458_v46, %v303_v6  ;;  %v325_v25 = vsel %vm313_vm1, %v303_v6, 0.0 }
  0xd2   :  { %v459_v60 = vpop.f32.mrf.mxu0  ;;  %v318_v62 = vadd.f32 %v317_v53, %v316_v54  ;;  %v369_v63 = vadd.f32 %v368_v58, %v367_v56  ;;  %v467_v28 = vpop.f32.mrf.mxu1  ;;  %v331_v50 = vsel %vm313_vm1, %v306_v24, 0.0  ;;  %v384_v51 = vsel %vm313_vm1, %v360_v43, 0.0 }
  0xd3   :  { %v355_v3 = vmul.f32 %v301_v59, %v154_v52  ;;  %v321_v9 = vsel %vm313_vm1, %v301_v59, 0.0  ;;  %v304_v12 = vmul.f32 %v459_v60, %v255_v42  ;;  %v378_v34 = vsel %vm313_vm1, %v357_v18, 0.0  ;;  %v290_v58 = vpop.permute.xlu0 %289 }
  0xd4   :  { %v157_v4 = vpop.f32.mrf.mxu0  ;;  %v371_v5 = vadd.f32 %v370_v0, %v369_v63  ;;  %v320_v7 = vadd.f32 %v319_v1, %v318_v62  ;;  %v308_v42 = vmul.f32 %v590_v40, %v275_v22  ;;  %v189_v48 = vpop.f32.mrf.mxu1  ;;  %v309_v52 = vmul.f32 %v280_v37, %v186_v17 }
  0xd5   :  { %v302_v13 = vmul.f32 %v245_v33, %v157_v4  ;;  %v374_v16 = vsel %vm313_vm1, %v355_v3, 0.0  ;;  %v358_v26 = vmul.f32 %v459_v60, %v304_v12  ;;  %v359_v33 = vmul.f32 %v305_v15, %v170_v35  ;;  %v295_v0 = vpop.permute.xlu1 %294 }
  0xd6   :  { %v322_v10 = vadd.f32 %v321_v9, %v320_v7  ;;  %v373_v11 = vadd.f32 %v372_v8, %v371_v5  ;;  %v327_v36 = vsel %vm313_vm1, %v304_v12, 0.0  ;;  %v361_v35 = vmul.f32 %v588_v32, %v307_v31 }
  0xd7   :  { %v323_v20 = vsel %vm313_vm1, %v302_v13, 0.0  ;;  %v356_v21 = vmul.f32 %v302_v13, %v157_v4  ;;  %v380_v44 = vsel %vm313_vm1, %v358_v26, 0.0  ;;  %v382_v49 = vsel %vm313_vm1, %v359_v33, 0.0 }
  0xd8   :  { %v375_v19 = vadd.f32 %v374_v16, %v373_v11  ;;  %v324_v23 = vadd.f32 %v323_v20, %v322_v10  ;;  %v362_v56 = vmul.f32 %v590_v40, %v308_v42  ;;  %v310_v57 = vmul.f32 %v285_v45, %v189_v48 }
  0xd9   :  { %v376_v27 = vsel %vm313_vm1, %v356_v21, 0.0  ;;  %v386_v61 = vsel %vm313_vm1, %v361_v35, 0.0  ;;  %v335_v32 = vsel %vm313_vm1, %v308_v42, 0.0  ;;  %v311_v62 = vmul.f32 %v599_v2, %v290_v58 }
  0xda   :  { %v326_v29 = vadd.f32 %v325_v25, %v324_v23  ;;  %v377_v30 = vadd.f32 %v376_v27, %v375_v19  ;;  %v363_v63 = vmul.f32 %v309_v52, %v186_v17  ;;  %v388_v4 = vsel %vm313_vm1, %v362_v56, 0.0 }
  0xdb   :  { %v337_v40 = vsel %vm313_vm1, %v309_v52, 0.0  ;;  %v312_v5 = vmul.f32 %v467_v28, %v295_v0  ;;  %v364_v6 = vmul.f32 %v310_v57, %v189_v48  ;;  %v365_v9 = vmul.f32 %v599_v2, %v311_v62 }
  0xdc   :  { %v328_v38 = vadd.f32 %v327_v36, %v326_v29  ;;  %v379_v39 = vadd.f32 %v378_v34, %v377_v30  ;;  %v390_v10 = vsel %vm313_vm1, %v363_v63, 0.0  ;;  %v339_v11 = vsel %vm313_vm1, %v310_v57, 0.0 }
  0xdd   :  { %v341_v14 = vsel %vm313_vm1, %v311_v62, 0.0  ;;  %v366_v15 = vmul.f32 %v467_v28, %v312_v5  ;;  %v392_v16 = vsel %vm313_vm1, %v364_v6, 0.0  ;;  %v394_v19 = vsel %vm313_vm1, %v365_v9, 0.0 }
  0xde   :  { %v330_v46 = vadd.f32 %v329_v41, %v328_v38  ;;  %v381_v47 = vadd.f32 %v380_v44, %v379_v39  ;;  %v343_v20 = vsel %vm313_vm1, %v312_v5, 0.0  ;;  %v411_v34 = vlaneseq }
  0xdf   :  { %v396_v2 = vsel %vm313_vm1, %v366_v15, 0.0 }
  0xe0   :  { %v383_v53 = vadd.f32 %v382_v49, %v381_v47  ;;  %v332_v54 = vadd.f32 %v331_v50, %v330_v46  ;;  %v412_v37 = vshrl.u32 %v411_v34, 7 }
  0xe2   :  { %v334_v59 = vadd.f32 %v333_v55, %v332_v54  ;;  %v385_v60 = vadd.f32 %v384_v51, %v383_v53  ;;  %v416_v39 = vsub.s32 0, %v412_v37  ;;  %vm413_vm3 = vcmp.eq.s32.totalorder %v412_v37, 0 }
  0xe4   :  { %v336_v1 = vadd.f32 %v335_v32, %v334_v59  ;;  %v387_v3 = vadd.f32 %v386_v61, %v385_v60 }
  0xe6   :  { %v338_v7 = vadd.f32 %v337_v40, %v336_v1  ;;  %v389_v8 = vadd.f32 %v388_v4, %v387_v3 }
  0xe8   :  { %v340_v12 = vadd.f32 %v339_v11, %v338_v7  ;;  %v391_v13 = vadd.f32 %v390_v10, %v389_v8 }
  0xea   :  { %v342_v17 = vadd.f32 %v341_v14, %v340_v12  ;;  %v393_v18 = vadd.f32 %v392_v16, %v391_v13 }
  0xec   :  { %v344_v21 = vadd.f32 %v343_v20, %v342_v17  ;;  %v395_v22 = vadd.f32 %v394_v19, %v393_v18 }
  0xee   :  { %v397_v23 = vadd.f32 %v396_v2, %v395_v22  ;;  %v345_v28 = vrot.slane %v344_v21, 4 }
  0xf0   :  { %v398_v24 = vrot.slane %v397_v23, 4  ;;  %v346_v31 = vadd.f32 %v345_v28, %v344_v21 }
  0xf2   :  { %v399_v25 = vadd.f32 %v398_v24, %v397_v23  ;;  %v347_v33 = vrot.slane %v346_v31, 2 }
  0xf4   :  { %v400_v26 = vrot.slane %v399_v25, 2  ;;  %v348_v36 = vadd.f32 %v347_v33, %v346_v31 }
  0xf6   :  { %v401_v27 = vadd.f32 %v400_v26, %v399_v25  ;;  %v349_v38 = vrot.slane %v348_v36, 1 }
  0xf8   :  { %v402_v29 = vrot.slane %v401_v27, 1  ;;  %v350_v41 = vadd.f32 %v349_v38, %v348_v36 }
  0xfa   :  { %v403_v30 = vadd.f32 %v402_v29, %v401_v27 }
  0xfc   :  { %405 = vrot.lane.b32.xlu0 %v403_v30, %s484_s2 }
 0x16e   :  { %v406_v42 = vpop.permute.xlu0 %405 }
 0x16f   :  { %v408_v43 = vsel %vm313_vm1, %v350_v41, %v406_v42 }
 0x170   :  { %v410_v44 = vsel %vm409_vm2, %v408_v43, 0.0 }
 0x171   :  { %v417_v45 = vrot.slane %v410_v44, %v416_v39 }
 0x173   :  { %v418_v46 = vsel %vm413_vm3, %v417_v45, 0.0 }
 0x174   :  { %419 = vst [vmem:[%s639_s3] sm:$0xff] %v418_v46 }

// kernel: _gridpool_mlp.3
= control target key start
LH: loop header
LB: loop body
LE: loop exit
PB: predicated region body
PF: predicated region fallthrough
CT: control target
= control target key end

     0   :  { %vm86_vm0 = vcmask 130048   ;;  %vm224_vm1 = vcmask 261120   ;;  %s423_s1 = inlined_call_operand.vmem [shape: bf16[16,32], index: 1, kind: input, shape index: {}]   ;;  %s424_s0 = inlined_call_operand.vmem [shape: bf16[128,16], index: 0, kind: input, shape index: {}]   ;;  %s425_s2 = inlined_call_operand.vmem [shape: f32[1,32], index: 2, kind: input, shape index: {}]   ;;  %s426_s3 = inlined_call_operand.vmem [shape: f32[128,32], index: 3, kind: output, shape index: {}]  }
   0x1   :  { %v292_v0 = vld [vmem:[%s423_s1] sm:$0xff]   ;;  %v295_v3 = vld [vmem:[%s424_s0 + $0x8] sm:$0xff]   ;;  %v297_v5 = vld [vmem:[%s424_s0 + $0x10] sm:$0xff]  }
   0x2   :  { %v293_v1 = vld [vmem:[%s424_s0] sm:$0xff]   ;;  %272 = vmatprep.subr.bf16.mxu0 %v292_v0  ;;  %290 = vmatprep.subr.bf16.mxu1 %v292_v0  ;;  %v296_v4 = vld [vmem:[%s424_s0 + $0x28] sm:$0xff]   ;;  %v298_v6 = vld [vmem:[%s424_s0 + $0x30] sm:$0xff]  }
   0x3   :  { %v294_v2 = vld [vmem:[%s424_s0 + $0x20] sm:$0xff]   ;;  %273 = vmatpush3.bf16.msra.mxu0 %v292_v0  ;;  %291 = vmatpush3.bf16.msra.mxu1 %v292_v0  ;;  %v299_v7 = vld [vmem:[%s424_s0 + $0x18] sm:$0xff]  }
   0x4   :  { %274 = vmatprep.mubr.msk.bf16.mxu0 %vm86_vm0, %v293_v1  ;;  %282 = vmatprep.mubr.msk.bf16.mxu1 %vm86_vm0, %v294_v2  ;;  %v300_v8 = vld [vmem:[%s424_s0 + $0x38] sm:$0xff]   ;;  %v245_v9 = vld [vmem:[%s425_s2] ss:$0 sm:$0xff] }
   0x6   :  { %275 = vmatmul.mubr.msk.bf16.vlgmr.msra.gmra.mxu0 %vm86_vm0, %v295_v3  ;;  %283 = vmatmul.mubr.msk.bf16.vlgmr.msra.gmra.mxu1 %vm86_vm0, %v296_v4 }
   0x7   :  { %278 = vmatprep.mubr.msk.bf16.mxu0 %vm86_vm0, %v297_v5  ;;  %286 = vmatprep.mubr.msk.bf16.mxu1 %vm86_vm0, %v298_v6 }
   0xe   :  { %279 = vmatmul.mubr.msk.bf16.gmra.mxu0 %vm86_vm0, %v299_v7  ;;  %287 = vmatmul.mubr.msk.bf16.gmra.mxu1 %vm86_vm0, %v300_v8 }
  0xc6   :  { %v276_v10 = vpop.f32.mrf.mxu0  ;;  %v284_v11 = vpop.f32.mrf.mxu1 }
  0xc7   :  { %v154_v12 = vadd.f32 %v276_v10, %v245_v9  ;;  %v186_v13 = vadd.f32 %v284_v11, %v245_v9 }
  0xc8   :  { %v145_v14 = vpop.f32.mrf.mxu0  ;;  %v177_v15 = vpop.f32.mrf.mxu1 }
  0xc9   :  { %v210_v16 = vmax.f32 %v154_v12, 0.0  ;;  %v218_v17 = vmax.f32 %v186_v13, 0.0  ;;  %v146_v18 = vadd.f32 %v245_v9, %v145_v14  ;;  %v178_v19 = vadd.f32 %v245_v9, %v177_v15 }
  0xca   :  { %v277_v20 = vpop.f32.mrf.mxu0  ;;  %v285_v21 = vpop.f32.mrf.mxu1 }
  0xcb   :  { %227 = vst.msk [vmem:[%s426_s3 + $0x10] sm:$0xff] %vm224_vm1, %v210_v16  ;;  %235 = vst.msk [vmem:[%s426_s3 + $0x50] sm:$0xff] %vm224_vm1, %v218_v17  ;;  %v208_v22 = vmax.f32 %v146_v18, 0.0  ;;  %v216_v23 = vmax.f32 %v178_v19, 0.0  ;;  %v157_v24 = vadd.f32 %v277_v20, %v245_v9  ;;  %v189_v25 = vadd.f32 %v285_v21, %v245_v9 }
  0xcc   :  { %v148_v26 = vpop.f32.mrf.mxu0  ;;  %v180_v27 = vpop.f32.mrf.mxu1 }
  0xcd   :  { %225 = vst.msk [vmem:[%s426_s3] sm:$0xff] %vm224_vm1, %v208_v22  ;;  %233 = vst.msk [vmem:[%s426_s3 + $0x40] sm:$0xff] %vm224_vm1, %v216_v23  ;;  %v211_v28 = vmax.f32 %v157_v24, 0.0  ;;  %v219_v29 = vmax.f32 %v189_v25, 0.0  ;;  %v149_v30 = vadd.f32 %v245_v9, %v148_v26  ;;  %v181_v31 = vadd.f32 %v245_v9, %v180_v27 }
  0xce   :  { %v280_v32 = vpop.f32.mrf.mxu0  ;;  %v288_v33 = vpop.f32.mrf.mxu1 }
  0xcf   :  { %228 = vst.msk [vmem:[%s426_s3 + $0x18] sm:$0xff] %vm224_vm1, %v211_v28  ;;  %236 = vst.msk [vmem:[%s426_s3 + $0x58] sm:$0xff] %vm224_vm1, %v219_v29  ;;  %v209_v34 = vmax.f32 %v149_v30, 0.0  ;;  %v217_v35 = vmax.f32 %v181_v31, 0.0  ;;  %v170_v36 = vadd.f32 %v280_v32, %v245_v9  ;;  %v202_v37 = vadd.f32 %v288_v33, %v245_v9 }
  0xd0   :  { %v161_v38 = vpop.f32.mrf.mxu0  ;;  %v193_v39 = vpop.f32.mrf.mxu1 }
  0xd1   :  { %226 = vst.msk [vmem:[%s426_s3 + $0x8] sm:$0xff] %vm224_vm1, %v209_v34  ;;  %234 = vst.msk [vmem:[%s426_s3 + $0x48] sm:$0xff] %vm224_vm1, %v217_v35  ;;  %v214_v40 = vmax.f32 %v170_v36, 0.0  ;;  %v222_v41 = vmax.f32 %v202_v37, 0.0  ;;  %v162_v42 = vadd.f32 %v245_v9, %v161_v38  ;;  %v194_v43 = vadd.f32 %v245_v9, %v193_v39 }
  0xd2   :  { %v281_v44 = vpop.f32.mrf.mxu0  ;;  %v289_v45 = vpop.f32.mrf.mxu1 }
  0xd3   :  { %231 = vst.msk [vmem:[%s426_s3 + $0x30] sm:$0xff] %vm224_vm1, %v214_v40  ;;  %239 = vst.msk [vmem:[%s426_s3 + $0x70] sm:$0xff] %vm224_vm1, %v222_v41  ;;  %v212_v46 = vmax.f32 %v162_v42, 0.0  ;;  %v220_v47 = vmax.f32 %v194_v43, 0.0  ;;  %v173_v48 = vadd.f32 %v281_v44, %v245_v9  ;;  %v205_v49 = vadd.f32 %v289_v45, %v245_v9 }
  0xd4   :  { %v164_v50 = vpop.f32.mrf.mxu0  ;;  %v196_v51 = vpop.f32.mrf.mxu1 }
  0xd5   :  { %229 = vst.msk [vmem:[%s426_s3 + $0x20] sm:$0xff] %vm224_vm1, %v212_v46  ;;  %237 = vst.msk [vmem:[%s426_s3 + $0x60] sm:$0xff] %vm224_vm1, %v220_v47  ;;  %v215_v52 = vmax.f32 %v173_v48, 0.0  ;;  %v223_v53 = vmax.f32 %v205_v49, 0.0  ;;  %v165_v54 = vadd.f32 %v245_v9, %v164_v50  ;;  %v197_v55 = vadd.f32 %v245_v9, %v196_v51 }
  0xd7   :  { %232 = vst.msk [vmem:[%s426_s3 + $0x38] sm:$0xff] %vm224_vm1, %v215_v52  ;;  %240 = vst.msk [vmem:[%s426_s3 + $0x78] sm:$0xff] %vm224_vm1, %v223_v53  ;;  %v213_v56 = vmax.f32 %v165_v54, 0.0  ;;  %v221_v57 = vmax.f32 %v197_v55, 0.0 }
  0xd9   :  { %230 = vst.msk [vmem:[%s426_s3 + $0x28] sm:$0xff] %vm224_vm1, %v213_v56  ;;  %238 = vst.msk [vmem:[%s426_s3 + $0x68] sm:$0xff] %vm224_vm1, %v221_v57 }

</bundles_post_ra>
